<compile_context>
chip_gen: v7x
topology: tpu7x:2x2x1
jax: 0.10.0
libtpu: 0.0.40
codegen_flags: <defaults>
</compile_context>

<pallas_src>
import functools
import math

import jax
import jax.numpy as jnp
from jax import lax
from jax.experimental import pallas as pl
from jax.experimental.pallas import tpu as pltpu


# Weights at or below this size are kept whole in VMEM (single DMA per call).
# BERT-base: Wqkv 3.4 MiB, Wo 1.1 MiB, Wi/Wd 4.5 MiB (bf16) all fit.
_RESIDENT_W_BYTES = 8 * 1024 * 1024


@functools.lru_cache(maxsize=None)
def _vmem_limit():
    """Generation-aware scoped-VMEM limit: ~3/4 of physical, capped.

    v5e/v6e have 128 MiB physical VMEM -> 96 MiB; v7x has 64 MiB/TC -> 48 MiB.
    """
    try:
        cap = int(pltpu.get_tpu_info().vmem_capacity_bytes)
        return int(min(cap * 3 // 4, 96 * 1024 * 1024))
    except Exception:
        return 48 * 1024 * 1024


def _pick_aligned(dim, target, mult):
    """Largest multiple of `mult` dividing `dim` and <= target; full dim fallback.

    Guarantees the returned block dim is either a multiple of `mult` or equal to
    the full array dim (both legal under the (8, 128) block constraint).
    """
    if dim <= target:
        return dim
    t = (target // mult) * mult
    while t >= mult:
        if dim % t == 0:
            return t
        t -= mult
    return dim


def _pick_rows(dim, target, dtype):
    mult = 16 if jnp.dtype(dtype).itemsize == 2 else 8
    return _pick_aligned(dim, target, mult)


def _pick_lanes(dim, target):
    return _pick_aligned(dim, target, 128)


def _gelu(y):
    # TODO(synk): HF BERT uses exact erf-GELU; tanh approximation kept for
    # guaranteed Mosaic lowering (matches torch gelu(approximate='tanh')).
    c = math.sqrt(2.0 / math.pi)
    return 0.5 * y * (1.0 + jnp.tanh(c * (y + 0.044715 * y * y * y)))


# --------------------- matmul + bias (+ fused GELU) ---------------------------

def _matmul_bias_resident_kernel(x_ref, w_ref, b_ref, o_ref, *, activation):
    y = jnp.dot(x_ref[...], w_ref[...],
                preferred_element_type=jnp.float32) + b_ref[...]
    if activation == "gelu":
        y = _gelu(y)
    o_ref[...] = y.astype(o_ref.dtype)


def _matmul_bias_tiled_kernel(x_ref, w_ref, b_ref, o_ref, acc_ref, *, activation):
    @pl.when(pl.program_id(2) == 0)
    def _():
        acc_ref[...] = jnp.zeros_like(acc_ref)

    acc_ref[...] += jnp.dot(x_ref[...], w_ref[...],
                            preferred_element_type=jnp.float32)

    @pl.when(pl.program_id(2) == pl.num_programs(2) - 1)
    def _():
        y = acc_ref[...] + b_ref[...]
        if activation == "gelu":
            y = _gelu(y)
        o_ref[...] = y.astype(o_ref.dtype)


def matmul_bias(x, w, b, activation=None, *, tm=512, tn=512, tk=512,
                out_dtype=jnp.bfloat16):
    M, K = x.shape
    _, N = w.shape
    tm = _pick_rows(M, tm, x.dtype)
    bias2d = b.reshape(1, N).astype(jnp.float32)
    w_bytes = K * N * jnp.dtype(w.dtype).itemsize

    if w_bytes <= _RESIDENT_W_BYTES:
        # Weight-resident path: whole (K, N) weight DMA'd once (constant index
        # map); grid iterates over row tiles only -> no reduction axis.
        # TODO(synk): pipeline_mode=pl.Buffered(1) on the constant-index weight
        # block would halve its VMEM footprint on v7x.
        return pl.pallas_call(
            functools.partial(_matmul_bias_resident_kernel, activation=activation),
            out_shape=jax.ShapeDtypeStruct((M, N), out_dtype),
            grid=(M // tm,),
            in_specs=[
                pl.BlockSpec((tm, K), lambda i: (i, 0)),
                pl.BlockSpec((K, N), lambda i: (0, 0)),
                pl.BlockSpec((1, N), lambda i: (0, 0)),
            ],
            out_specs=pl.BlockSpec((tm, N), lambda i: (i, 0)),
            compiler_params=pltpu.CompilerParams(
                dimension_semantics=("parallel",),
                vmem_limit_bytes=_vmem_limit()),
        )(x, w, bias2d)

    # Fallback: K/N-tiled reduction with an f32 VMEM accumulator.
    tn = _pick_lanes(N, tn)
    tk = _pick_lanes(K, tk)
    grid = (M // tm, N // tn, K // tk)
    return pl.pallas_call(
        functools.partial(_matmul_bias_tiled_kernel, activation=activation),
        out_shape=jax.ShapeDtypeStruct((M, N), out_dtype),
        grid=grid,
        in_specs=[
            pl.BlockSpec((tm, tk), lambda i, j, k: (i, k)),
            pl.BlockSpec((tk, tn), lambda i, j, k: (k, j)),
            pl.BlockSpec((1, tn), lambda i, j, k: (0, j)),
        ],
        out_specs=pl.BlockSpec((tm, tn), lambda i, j, k: (i, j)),
        scratch_shapes=[pltpu.VMEM((tm, tn), jnp.float32)],
        compiler_params=pltpu.CompilerParams(
            dimension_semantics=("parallel", "parallel", "arbitrary"),
            vmem_limit_bytes=_vmem_limit()),
    )(x, w, bias2d)


# ------------- matmul + bias + residual + LayerNorm (fused epilogue) ----------

def _ln_epilogue(h, g, be, eps):
    mean = jnp.mean(h, axis=-1, keepdims=True)
    c = h - mean
    var = jnp.mean(c * c, axis=-1, keepdims=True)
    return c * lax.rsqrt(var + eps) * g + be


def _mm_res_ln_resident_kernel(x_ref, w_ref, b_ref, r_ref, g_ref, be_ref,
                               o_ref, *, eps):
    h = (jnp.dot(x_ref[...], w_ref[...], preferred_element_type=jnp.float32)
         + b_ref[...] + r_ref[...].astype(jnp.float32))
    o_ref[...] = _ln_epilogue(h, g_ref[...], be_ref[...], eps).astype(o_ref.dtype)


def _mm_res_ln_tiled_kernel(x_ref, w_ref, b_ref, r_ref, g_ref, be_ref,
                            o_ref, acc_ref, *, eps):
    @pl.when(pl.program_id(1) == 0)
    def _():
        acc_ref[...] = jnp.zeros_like(acc_ref)

    acc_ref[...] += jnp.dot(x_ref[...], w_ref[...],
                            preferred_element_type=jnp.float32)

    @pl.when(pl.program_id(1) == pl.num_programs(1) - 1)
    def _():
        h = acc_ref[...] + b_ref[...] + r_ref[...].astype(jnp.float32)
        o_ref[...] = _ln_epilogue(h, g_ref[...], be_ref[...], eps).astype(o_ref.dtype)


def matmul_bias_residual_ln(x, w, b, residual, gamma, beta, *, eps=1e-12,
                            tm=512, tk=512, out_dtype=jnp.bfloat16):
    """LayerNorm((x @ w + b) + residual), LN fused into the matmul epilogue.

    N (= hidden) is kept whole on the lane axis so the row-wise LN statistics
    can be computed in-kernel.
    """
    M, K = x.shape
    _, N = w.shape
    tm = _pick_rows(M, tm, x.dtype)
    b2 = b.reshape(1, N).astype(jnp.float32)
    g2 = gamma.reshape(1, N).astype(jnp.float32)
    be2 = beta.reshape(1, N).astype(jnp.float32)
    w_bytes = K * N * jnp.dtype(w.dtype).itemsize

    if w_bytes <= _RESIDENT_W_BYTES:
        # Weight-resident: one DMA of the whole weight, grid over row tiles only.
        return pl.pallas_call(
            functools.partial(_mm_res_ln_resident_kernel, eps=eps),
            out_shape=jax.ShapeDtypeStruct((M, N), out_dtype),
            grid=(M // tm,),
            in_specs=[
                pl.BlockSpec((tm, K), lambda i: (i, 0)),
                pl.BlockSpec((K, N), lambda i: (0, 0)),
                pl.BlockSpec((1, N), lambda i: (0, 0)),
                pl.BlockSpec((tm, N), lambda i: (i, 0)),
                pl.BlockSpec((1, N), lambda i: (0, 0)),
                pl.BlockSpec((1, N), lambda i: (0, 0)),
            ],
            out_specs=pl.BlockSpec((tm, N), lambda i: (i, 0)),
            compiler_params=pltpu.CompilerParams(
                dimension_semantics=("parallel",),
                vmem_limit_bytes=_vmem_limit()),
        )(x, w, b2, residual, g2, be2)

    # Fallback: K-tiled reduction (residual/gamma/beta constant along K).
    tk = _pick_lanes(K, tk)
    grid = (M // tm, K // tk)
    return pl.pallas_call(
        functools.partial(_mm_res_ln_tiled_kernel, eps=eps),
        out_shape=jax.ShapeDtypeStruct((M, N), out_dtype),
        grid=grid,
        in_specs=[
            pl.BlockSpec((tm, tk), lambda i, k: (i, k)),
            pl.BlockSpec((tk, N), lambda i, k: (k, 0)),
            pl.BlockSpec((1, N), lambda i, k: (0, 0)),
            pl.BlockSpec((tm, N), lambda i, k: (i, 0)),
            pl.BlockSpec((1, N), lambda i, k: (0, 0)),
            pl.BlockSpec((1, N), lambda i, k: (0, 0)),
        ],
        out_specs=pl.BlockSpec((tm, N), lambda i, k: (i, 0)),
        scratch_shapes=[pltpu.VMEM((tm, N), jnp.float32)],
        compiler_params=pltpu.CompilerParams(
            dimension_semantics=("parallel", "arbitrary"),
            vmem_limit_bytes=_vmem_limit()),
    )(x, w, b2, residual, g2, be2)


# ---------------- embedding sum + LayerNorm (fused, no f32 HBM round trip) ----

def _embed_ln_kernel(we_ref, pt_ref, g_ref, b_ref, o_ref, *, eps):
    h = we_ref[...].astype(jnp.float32) + pt_ref[...].astype(jnp.float32)
    o_ref[...] = _ln_epilogue(h, g_ref[...], b_ref[...], eps).astype(o_ref.dtype)


def embed_layernorm(we, pos_type, gamma, beta, *, eps=1e-12, ts=256,
                    out_dtype=jnp.bfloat16):
    """LayerNorm(word_emb + (pos_emb + type_emb)) -> flattened (B*S, H) bf16."""
    B, S, H = we.shape
    ts = _pick_rows(S, ts, we.dtype)
    ns = S // ts
    return pl.pallas_call(
        functools.partial(_embed_ln_kernel, eps=eps),
        out_shape=jax.ShapeDtypeStruct((B * S, H), out_dtype),
        grid=(B, ns),
        in_specs=[
            pl.BlockSpec((None, ts, H), lambda b, si: (b, si, 0)),
            pl.BlockSpec((ts, H), lambda b, si: (si, 0)),
            pl.BlockSpec((1, H), lambda b, si: (0, 0)),
            pl.BlockSpec((1, H), lambda b, si: (0, 0)),
        ],
        out_specs=pl.BlockSpec((ts, H), lambda b, si: (b * ns + si, 0)),
        compiler_params=pltpu.CompilerParams(
            dimension_semantics=("parallel", "parallel"),
            vmem_limit_bytes=_vmem_limit()),
    )(we, pos_type, gamma.reshape(1, H).astype(jnp.float32),
      beta.reshape(1, H).astype(jnp.float32))


# -------------------------------- attention -----------------------------------

def _attention_kernel(q_ref, kv_ref, m_ref, o_ref, *, scale, num_heads, head_dim):
    """All heads for one (batch, q-tile): softmax(q k^T * scale + mask) @ v."""
    tq = q_ref.shape[0]
    S = kv_ref.shape[0]
    H = num_heads * head_dim

    # Hoisted once: JAX does not CSE broadcast_in_dim across the unrolled loop.
    bias = jnp.broadcast_to(m_ref[...].astype(jnp.float32), (tq, S))
    # One K transpose per grid step instead of one per head (XLU pressure).
    kt = kv_ref[:, H:2 * H].T                                   # (H, S)

    def head_ctx(h):
        lo = h * head_dim
        q = q_ref[:, lo:lo + head_dim]                          # (tq, d)
        k = kt[lo:lo + head_dim, :]                             # (d, S)
        v = kv_ref[:, 2 * H + lo:2 * H + lo + head_dim]         # (S, d)
        s = jnp.dot(q, k, preferred_element_type=jnp.float32) * scale + bias
        mx = jnp.max(s, axis=-1, keepdims=True)
        e = jnp.exp(s - mx)
        p = e * pl.reciprocal(jnp.sum(e, axis=-1, keepdims=True), approx=True)
        return jnp.dot(p.astype(v.dtype), v, preferred_element_type=jnp.float32)

    # Stream contexts straight into the output block, two heads at a time so the
    # store is 2*head_dim lanes wide (128 for BERT-base -> unmasked vst).
    # TODO(synk): for very long sequences switch to a KV-tiled online-softmax
    # (flash-style) loop so the (tq, S) scores shrink further.
    pair = 2 if num_heads % 2 == 0 else 1
    for h0 in range(0, num_heads, pair):
        ctx = head_ctx(h0)
        if pair == 2:
            ctx = jnp.concatenate([ctx, head_ctx(h0 + 1)], axis=-1)
        lo = h0 * head_dim
        o_ref[:, lo:lo + pair * head_dim] = ctx.astype(o_ref.dtype)


def attention(qkv, amask, *, batch, seq, num_heads, head_dim, tq=256):
    M, threeH = qkv.shape
    assert M == batch * seq, "attention expects qkv packed as (batch*seq, 3H)"
    H = num_heads * head_dim
    tq = _pick_rows(seq, tq, qkv.dtype)
    nq = seq // tq
    scale = 1.0 / math.sqrt(head_dim)
    return pl.pallas_call(
        functools.partial(_attention_kernel, scale=scale,
                          num_heads=num_heads, head_dim=head_dim),
        out_shape=jax.ShapeDtypeStruct((M, H), jnp.bfloat16),
        grid=(batch, nq),
        in_specs=[
            # q rows for this tile (packed Q|K|V columns; only Q cols are read)
            pl.BlockSpec((tq, threeH), lambda b, qi: (b * nq + qi, 0)),
            # full-sequence K/V rows for this batch element
            pl.BlockSpec((seq, threeH), lambda b, qi: (b, 0)),
            # compact (1, S) additive key mask, broadcast over queries in-kernel
            pl.BlockSpec((None, 1, seq), lambda b, qi: (b, 0, 0)),
        ],
        out_specs=pl.BlockSpec((tq, H), lambda b, qi: (b * nq + qi, 0)),
        compiler_params=pltpu.CompilerParams(
            dimension_semantics=("parallel", "parallel"),
            vmem_limit_bytes=_vmem_limit()),
    )(qkv, qkv, amask)


# ----------------------------- classifier head ---------------------------------

def _classifier_kernel(x_ref, w_ref, b_ref, o_ref, *, smax):
    # (C, S) = W^T X^T via dot_general: the output's last (lane) axis is the
    # sequence, so stores are lane-dense and the PyTorch logits.transpose(1, 2)
    # happens "for free" via the out_spec layout.
    y = lax.dot_general(w_ref[...], x_ref[...], (((0,), (1,)), ((), ())),
                        preferred_element_type=jnp.float32)
    y = y + b_ref[...]                       # (C, 1) broadcasts over sequence
    if smax:
        m = jnp.max(y, axis=0, keepdims=True)
        e = jnp.exp(y - m)
        y = e / jnp.sum(e, axis=0, keepdims=True)
    o_ref[...] = y.astype(o_ref.dtype)


def classifier_head(x, w, b, *, batch, seq, smax):
    M, H = x.shape
    assert M == batch * seq
    _, C = w.shape
    return pl.pallas_call(
        functools.partial(_classifier_kernel, smax=smax),
        out_shape=jax.ShapeDtypeStruct((batch, C, seq), jnp.float32),
        grid=(batch,),
        in_specs=[
            pl.BlockSpec((seq, H), lambda bi: (bi, 0)),
            pl.BlockSpec((H, C), lambda bi: (0, 0)),
            pl.BlockSpec((C, 1), lambda bi: (0, 0)),
        ],
        out_specs=pl.BlockSpec((None, C, seq), lambda bi: (bi, 0, 0)),
        compiler_params=pltpu.CompilerParams(
            dimension_semantics=("parallel",),
            vmem_limit_bytes=_vmem_limit()),
    )(x, w, b.reshape(C, 1).astype(jnp.float32))


# ------------------------------ Model (glue) -----------------------------------

def init_params(key, *, vocab, max_pos, H, nH, FFN, L, C):
    def nxt():
        nonlocal key
        key, sub = jax.random.split(key)
        return sub

    def w(shape, scale=0.02, dtype=jnp.bfloat16):
        return (scale * jax.random.normal(nxt(), shape)).astype(dtype)

    params = dict(
        num_heads=nH,
        word_emb=w((vocab, H), dtype=jnp.float32),
        pos_emb=w((max_pos, H), dtype=jnp.float32),
        type_emb=w((2, H), dtype=jnp.float32),
        emb_ln_g=jnp.ones((H,), jnp.float32),
        emb_ln_b=jnp.zeros((H,), jnp.float32),
        Wc=w((H, C)),
        bc=jnp.zeros((C,), jnp.float32),
        layers=[],
    )
    for _ in range(L):
        params["layers"].append(dict(
            # Fused QKV projection weight (H, 3H), bf16; biases / LN params f32.
            Wqkv=jnp.concatenate([w((H, H)), w((H, H)), w((H, H))], axis=1),
            bqkv=jnp.zeros((3 * H,), jnp.float32),
            Wo=w((H, H)), bo=jnp.zeros((H,), jnp.float32),
            attn_ln_g=jnp.ones((H,), jnp.float32),
            attn_ln_b=jnp.zeros((H,), jnp.float32),
            Wi=w((H, FFN)), bi=jnp.zeros((FFN,), jnp.float32),
            Wd=w((FFN, H)), bd=jnp.zeros((H,), jnp.float32),
            ffn_ln_g=jnp.ones((H,), jnp.float32),
            ffn_ln_b=jnp.zeros((H,), jnp.float32),
        ))
    return params


def custom_bert_forward(params, ids, msk, smax=False):
    B, S = ids.shape
    H = params["emb_ln_g"].shape[0]
    nH = params["num_heads"]
    assert H % nH == 0
    dH = H // nH

    # --- embeddings: gather is JAX glue; sum + LN fused into one Pallas kernel ---
    we = jnp.take(params["word_emb"], ids, axis=0)               # (B, S, H)
    pt = params["pos_emb"][:S] + params["type_emb"][0][None, :]  # token_type_ids == 0
    x = embed_layernorm(we, pt, params["emb_ln_g"], params["emb_ln_b"])  # (B*S, H) bf16

    # --- compact additive mask (B, 1, S); broadcast over queries in-kernel ---
    amask = ((1.0 - msk.astype(jnp.float32)) * -10000.0).reshape(B, 1, S)

    # --- transformer layers ---
    for layer in params["layers"]:
        qkv = matmul_bias(x, layer["Wqkv"], layer["bqkv"])               # (B*S, 3H)
        ctx = attention(qkv, amask, batch=B, seq=S,
                        num_heads=nH, head_dim=dH)                       # (B*S, H)
        x = matmul_bias_residual_ln(ctx, layer["Wo"], layer["bo"], x,
                                    layer["attn_ln_g"], layer["attn_ln_b"])
        inter = matmul_bias(x, layer["Wi"], layer["bi"], activation="gelu")
        x = matmul_bias_residual_ln(inter, layer["Wd"], layer["bd"], x,
                                    layer["ffn_ln_g"], layer["ffn_ln_b"])

    # --- classifier head: Linear(H -> C), optional softmax, output (B, C, S) ---
    return classifier_head(x, params["Wc"], params["bc"],
                           batch=B, seq=S, smax=smax)


# ---------------------------------- main ----------------------------------------

if __name__ == "__main__":
    # Small shapes consistent with the module's forward:
    B, S = 2, 8              # batch, sequence length
    H, nH, FFN = 32, 4, 64   # scaled-down hidden / heads / intermediate
    L = 2                    # scaled-down number of encoder layers
    C = 4                    # num_classes
    VOCAB, MAX_POS = 50, 16

    root = jax.random.PRNGKey(0)
    k_params, k_ids = jax.random.split(root)
    params = init_params(k_params, vocab=VOCAB, max_pos=MAX_POS,
                         H=H, nH=nH, FFN=FFN, L=L, C=C)

    ids = jax.random.randint(k_ids, (B, S), 0, VOCAB, dtype=jnp.int32)
    msk = jnp.array([[1, 1, 1, 1, 1, 1, 1, 1],
                     [1, 1, 1, 1, 1, 0, 0, 0]], dtype=jnp.int32)

    out_plain = custom_bert_forward(params, ids, msk, smax=False)   # (B, C, S)
    out_smax = custom_bert_forward(params, ids, msk, smax=True)     # (B, C, S)
    jax.block_until_ready((out_plain, out_smax))

    assert out_plain.shape == (B, C, S)
    assert out_smax.shape == (B, C, S)
    assert bool(jnp.all(jnp.isfinite(out_plain)))
    assert bool(jnp.all(jnp.isfinite(out_smax)))
    print("KERNEL_OK")
</pallas_src>

<mosaic_0001>
module attributes {stable_mosaic.version = 11 : i64} {
  func.func @_embed_ln_kernel(%arg0: i32, %arg1: i32, %arg2: memref<1x8x32xf32, #tpu.memory_space<vmem>>, %arg3: memref<8x32xf32, #tpu.memory_space<vmem>>, %arg4: memref<1x32xf32, #tpu.memory_space<vmem>>, %arg5: memref<1x32xf32, #tpu.memory_space<vmem>>, %arg6: memref<8x32xbf16, #tpu.memory_space<vmem>>) attributes {dimension_semantics = [#tpu.dimension_semantics<parallel>, #tpu.dimension_semantics<parallel>], iteration_bounds = array<i64: 2, 1>, scalar_prefetch = 0 : i64, scratch_operands = 0 : i64, tpu.core_type = #tpu.core_type<tc>, window_params = [{transform_indices = @transform_0, window_bounds = array<i64: 1, 8, 32>}, {transform_indices = @transform_1, window_bounds = array<i64: 8, 32>}, {pipeline_mode = #tpu.pipeline_mode<synchronous>, transform_indices = @transform_2, window_bounds = array<i64: 1, 32>}, {pipeline_mode = #tpu.pipeline_mode<synchronous>, transform_indices = @transform_3, window_bounds = array<i64: 1, 32>}, {transform_indices = @transform_4, window_bounds = array<i64: 8, 32>}]} {
    %c0 = arith.constant 0 : index
    %c0_0 = arith.constant 0 : index
    %c0_1 = arith.constant 0 : index
    %0 = vector.load %arg2[%c0, %c0_0, %c0_1] : memref<1x8x32xf32, #tpu.memory_space<vmem>>, vector<1x8x32xf32>
    %1 = vector.shape_cast %0 : vector<1x8x32xf32> to vector<8x32xf32>
    %c0_2 = arith.constant 0 : index
    %c0_3 = arith.constant 0 : index
    %2 = vector.load %arg3[%c0_2, %c0_3] : memref<8x32xf32, #tpu.memory_space<vmem>>, vector<8x32xf32>
    %3 = arith.addf %1, %2 : vector<8x32xf32>
    %c0_4 = arith.constant 0 : index
    %c0_5 = arith.constant 0 : index
    %4 = vector.load %arg4[%c0_4, %c0_5] : memref<1x32xf32, #tpu.memory_space<vmem>>, vector<1x32xf32>
    %c0_6 = arith.constant 0 : index
    %c0_7 = arith.constant 0 : index
    %5 = vector.load %arg5[%c0_6, %c0_7] : memref<1x32xf32, #tpu.memory_space<vmem>>, vector<1x32xf32>
    %cst = arith.constant dense<0.000000e+00> : vector<8xf32>
    %6 = vector.multi_reduction <add>, %3, %cst [1] : vector<8x32xf32> to vector<8xf32>
    %7 = vector.shape_cast %6 : vector<8xf32> to vector<8x1xf32>
    %cst_8 = arith.constant 3.200000e+01 : f32
    %8 = vector.broadcast %cst_8 : f32 to vector<8x1xf32>
    %9 = arith.divf %7, %8 : vector<8x1xf32>
    %10 = vector.broadcast %9 : vector<8x1xf32> to vector<8x32xf32>
    %11 = arith.subf %3, %10 : vector<8x32xf32>
    %12 = arith.mulf %11, %11 : vector<8x32xf32>
    %cst_9 = arith.constant dense<0.000000e+00> : vector<8xf32>
    %13 = vector.multi_reduction <add>, %12, %cst_9 [1] : vector<8x32xf32> to vector<8xf32>
    %14 = vector.shape_cast %13 : vector<8xf32> to vector<8x1xf32>
    %cst_10 = arith.constant 3.200000e+01 : f32
    %15 = vector.broadcast %cst_10 : f32 to vector<8x1xf32>
    %16 = arith.divf %14, %15 : vector<8x1xf32>
    %cst_11 = arith.constant 9.99999996E-13 : f32
    %17 = vector.broadcast %cst_11 : f32 to vector<8x1xf32>
    %18 = arith.addf %16, %17 : vector<8x1xf32>
    %19 = math.rsqrt %18 : vector<8x1xf32>
    %20 = vector.broadcast %19 : vector<8x1xf32> to vector<8x32xf32>
    %21 = arith.mulf %11, %20 : vector<8x32xf32>
    %22 = vector.broadcast %4 : vector<1x32xf32> to vector<8x32xf32>
    %23 = arith.mulf %21, %22 : vector<8x32xf32>
    %24 = vector.broadcast %5 : vector<1x32xf32> to vector<8x32xf32>
    %25 = arith.addf %23, %24 : vector<8x32xf32>
    %26 = arith.truncf %25 : vector<8x32xf32> to vector<8x32xbf16>
    %c0_12 = arith.constant 0 : index
    %c0_13 = arith.constant 0 : index
    %27 = vector.load %arg6[%c0_12, %c0_13] : memref<8x32xbf16, #tpu.memory_space<vmem>>, vector<8x32xbf16>
    tpu.vector_store %arg6[%c0_12, %c0_13], %26 {strides = array<i32>} : memref<8x32xbf16, #tpu.memory_space<vmem>>, vector<8x32xbf16>,
    return
  }
  func.func @transform_0(%arg0: i32, %arg1: i32) -> (i32, i32, i32) {
    %c0_i32 = arith.constant 0 : i32
    %c0_i32_0 = arith.constant 0 : i32
    return %arg0, %arg1, %c0_i32 : i32, i32, i32
  }
  func.func @transform_1(%arg0: i32, %arg1: i32) -> (i32, i32) {
    %c0_i32 = arith.constant 0 : i32
    %c0_i32_0 = arith.constant 0 : i32
    return %arg1, %c0_i32 : i32, i32
  }
  func.func @transform_2(%arg0: i32, %arg1: i32) -> (i32, i32) {
    %c0_i32 = arith.constant 0 : i32
    %c0_i32_0 = arith.constant 0 : i32
    %c0_i32_1 = arith.constant 0 : i32
    return %c0_i32, %c0_i32_0 : i32, i32
  }
  func.func @transform_3(%arg0: i32, %arg1: i32) -> (i32, i32) {
    %c0_i32 = arith.constant 0 : i32
    %c0_i32_0 = arith.constant 0 : i32
    %c0_i32_1 = arith.constant 0 : i32
    return %c0_i32, %c0_i32_0 : i32, i32
  }
  func.func @transform_4(%arg0: i32, %arg1: i32) -> (i32, i32) {
    %c1_i32 = arith.constant 1 : i32
    %0 = arith.muli %arg0, %c1_i32 : i32
    %1 = arith.addi %0, %arg1 : i32
    %c0_i32 = arith.constant 0 : i32
    %c0_i32_0 = arith.constant 0 : i32
    return %1, %c0_i32 : i32, i32
  }
}

</mosaic_0001>

<bundles_post_ra>
// kernel: tpu_custom_call.1
= control target key start
LH: loop header
LB: loop body
LE: loop exit
PB: predicated region body
PF: predicated region fallthrough
CT: control target
= control target key end

     0   :  { %9 = vsyncpa [#allocation3], 0  ;;  %s884_s0 = inlined_call_operand.hbm [shape: f32[2,8,32], index: 0, kind: input, shape index: {}]   ;;  %s885_s1 = inlined_call_operand.hbm [shape: f32[8,32], index: 1, kind: input, shape index: {}]   ;;  %s886_s2 = inlined_call_operand.vmem [shape: f32[1,32], index: 2, kind: input, shape index: {}]   ;;  %s887_s3 = inlined_call_operand.vmem [shape: f32[1,32], index: 3, kind: input, shape index: {}]   ;;  %s888_s4 = inlined_call_operand.hbm [shape: bf16[16,32], index: 4, kind: output, shape index: {}]  }
   0x1   :  { %11 = vsyncpa [#allocation3 + $0x1], 0 }
   0x2   :  { %12 = vsyncpa [#allocation6], 0 }
   0x3   :  { %13 = vsyncpa [#allocation4], 0 }
   0x4   :  { %15 = vsyncpa [#allocation4 + $0x1], 0  ;;  %s661_s15 = smov 0   ;;  %s663_s16 = smov 0  }
   0x5   :  { %s665_s17 = smov 0   ;;  %s667_s18 = smov 0  }
   0x6   :  { %s669_s19 = smov 0   ;;  %s671_s20 = smov 0  }
   0x7 LB: > { %s395_s21 = sadd.s32 4294967295, %s631_s20   ;;  %s396_s22 = sadd.s32 4294967294, %s631_s20   ;;  %s631_s20 = sphi %s671_s20, %s21_s20   ;;  %s627_s19 = sphi %s669_s19, %s913_s19   ;;  %s623_s18 = sphi %s667_s18, %s912_s18   ;;  %s619_s17 = sphi %s665_s17, %s911_s17   ;;  %s615_s16 = sphi %s663_s16, %s910_s16   ;;  %s611_s15 = sphi %s661_s15, %s909_s15  }
   0x8   : > { %p55_p0 = scmp.ne.s32.totalorder %s615_s16, %s611_s15  ;;  %p695_p1 = scmp.eq.s32.totalorder %s395_s21, 0 }
   0x9   : > { %p699_p2 = scmp.eq.s32.totalorder %s395_s21, 1  ;;  %p155_p3 = scmp.eq.s32.totalorder %s396_s22, 1 }
   0xa   : > { %s893_s23 = scalar_select %p695_p1, 1, 0 }
   0xb   : > { %s894_s24 = scalar_select %p699_p2, 1, 0 }
   0xc   : > { %p705_p4 = por %p695_p1, %p55_p0  ;;  %p397_p5 = scmp.ge.s32.totalorder %s631_s20, 1 }
   0xd   : > { %p710_p6 = por %p155_p3, %p55_p0  ;;  %p162_p7 = scmp.lt.s32.totalorder %s631_s20, 3 }
   0xe   : > { %s895_s25 = scalar_select %p705_p4, 1, 0 }
   0xf   : > { %s896_s26 = scalar_select %p710_p6, 1, 0 }
  0x10   : > { %p715_p8 = pnand %p397_p5, %p162_p7  ;;  %s633_s28 = smov [#allocation5]  }
  0x11   : > { %s177_s29 = sshll.u32 %s633_s28, 4  ;;  %s33_s5 = sadd.s32 1, %s627_s19  ;;  %s178_s29 = int_to_ptr.vmem [resolvable:$true] %s177_s29 }
  0x12   : > { %s897_s27 = scalar_select %p715_p8, 1, 0 }
  0x13   : > { %p420_p10 = pneg %p715_p8  ;;  %s42_s6 = sadd.s32 1, %s619_s17 }
  0x14   : > { %p730_p12 = scmp.ge.s32.totalorder %s33_s5, 2  ;;  %s487_s10 = scalar_lea.hbm %s885_s1, 128 }
  0x15   : > { %p724_p11 = pnand %p420_p10, %p695_p1  ;;  %p488_p13 = scmp.ne.s32.totalorder %s885_s1, %s487_s10 }
  0x16   : > { %s899_s7 = scalar_select %p730_p12, 1, 0 }
  0x17   : > { %p489_p0 = pneg %p724_p11  ;;  %p494_p7 = scmp.lt.u32.totalorder %s487_s10, %s885_s1 }
  0x19   : > { %p490_p3 = pnand %p489_p0, %p488_p13 }
  0x1b   : > { %p491_p5 = pneg %p490_p3 }
  0x1d   : > { %p496_p10 = pnand %p494_p7, %p491_p5 }
  0x1f   : > { %499 = shalt.err (!%p496_p10)
}
  0x20   : > { %s500_s21 = scalar_lea.vmem %s178_s29, 128  ;;  %p508_p4 = scmp.lt.s32.totalorder %s178_s29, %s178_s29 }
  0x21   : > { %p501_p9 = scmp.ne.s32.totalorder %s178_s29, %s500_s21  ;;  %p509_p8 = scmp.lt.s32.totalorder %s500_s21, %s500_s21 }
  0x23   : > { %p503_p6 = pnand %p501_p9, %p489_p0  ;;  %p510_p2 = por %p509_p8, %p508_p4 }
  0x25   : > { %p504_p1 = pneg %p503_p6 }
  0x27   : > { %p511_p12 = pnand %p510_p2, %p504_p1 }
  0x29   : > { %514 = shalt.err (!%p511_p12)
}
  0x2a   : > { %423 = dma.hbm_to_vmem [thread:$0]  (!%p724_p11), %s885_s1, 128, %s178_s29, [#allocation6]  }
  0x2b   : > { %p900_p4 = scmp.ne.s32.totalorder %s899_s7, 0  ;;  %p49_p1 = scmp.ne.s32.totalorder %s619_s17, %s615_s16 }
  0x2c   : > { %p50_p2 = scmp.eq.s32.totalorder %s631_s20, 0  ;;  %p433_p6 = scmp.lt.s32.totalorder %s631_s20, 2 }
  0x2d   : > { %s915_s5 = smov (%p900_p4, %s33_s5), 0  ;;  %p901_p12 = scmp.ne.s32.totalorder %s894_s24, 0 }
  0x2e   : > { %s37_s30 = ssub.s32 %s627_s19, %s915_s5  ;;  %p51_p9 = por %p50_p2, %p49_p1 }
  0x2f   : > { %p40_p8 = scmp.eq.s32.totalorder %s37_s30, 0  ;;  %p762_p13 = por %p901_p12, %p49_p1 }
  0x30   : > { %s194_s9 = sand.u32 1, %s619_s17   ;;  %s401_s7 = sshll.u32 %s627_s19, 7 }
  0x31   : > { %s770_s10 = scalar_select %p40_p8, %s619_s17, %s42_s6  }
  0x32   : > { %s400_s29 = sshll.u32 %s194_s9, 3  ;;  %s776_s13 = scalar_lea.hbm %s884_s0, %s401_s7 }
  0x33   : > { %s198_s24 = scalar_lea.vmem [#allocation2], %s400_s29  ;;  %p780_p11 = pnand %p433_p6, %p51_p9 }
  0x34   : > { %s206_s14 = sshll.u32 %s198_s24, 4  ;;  %s195_s6 = scalar_lea.sflag [#allocation3], %s194_s9  ;;  %s778_s14 = int_to_ptr.vmem [resolvable:$true] %s206_s14 }
  0x35   : > { %s515_s22 = scalar_lea.hbm %s776_s13, 128  ;;  %p517_p3 = pneg %p780_p11 }
  0x36   : > { %p516_p0 = scmp.ne.s32.totalorder %s776_s13, %s515_s22  ;;  %s520_s29 = scalar_lea.hbm %s884_s0, 256 }
  0x37   : > { %p521_p10 = scmp.lt.u32.totalorder %s776_s13, %s884_s0  ;;  %p522_p4 = scmp.lt.u32.totalorder %s520_s29, %s515_s22 }
  0x38   : > { %p518_p5 = pnand %p517_p3, %p516_p0  ;;  %p524_p2 = scmp.lt.u32.totalorder %s515_s22, %s776_s13 }
  0x39   : > { %p523_p1 = por %p522_p4, %p521_p10 }
  0x3a   : > { %p519_p7 = pneg %p518_p5 }
  0x3b   : > { %p525_p6 = por %p524_p2, %p523_p1 }
  0x3d   : > { %p526_p8 = pnand %p525_p6, %p519_p7 }
  0x3f   : > { %529 = shalt.err (!%p526_p8)
}
  0x40   : > { %s530_s9 = scalar_lea.vmem %s778_s14, 128  ;;  %s634_s12 = smov [#allocation2]  }
  0x41   : > { %p531_p9 = scmp.ne.s32.totalorder %s778_s14, %s530_s9  ;;  %s535_s24 = sshll.u32 %s634_s12, 4  ;;  %s536_s24 = int_to_ptr.vmem [resolvable:$false] %s535_s24 }
  0x42   : > { %s537_s28 = scalar_lea.vmem %s536_s24, 256  ;;  %p538_p5 = scmp.lt.s32.totalorder %s778_s14, %s536_s24 }
  0x43   : > { %p533_p12 = pnand %p531_p9, %p517_p3  ;;  %p539_p10 = scmp.lt.s32.totalorder %s537_s28, %s530_s9 }
  0x45   : > { %p534_p0 = pneg %p533_p12  ;;  %p540_p4 = por %p539_p10, %p538_p5 }
  0x47   : > { %p541_p1 = pnand %p540_p4, %p534_p0 }
  0x49   : > { %544 = shalt.err (!%p541_p1)
}
  0x4a   : > { %427 = dma.hbm_to_vmem [thread:$0]  (!%p780_p11), %s776_s13, 128, %s778_s14, %s195_s6  }
  0x4b   : > { %p904_p7 = scmp.ne.s32.totalorder %s897_s27, 0 }
  0x4c   : > { %s812_s22 = sand.u32 (!%p904_p7), 1, %s615_s16   ;;  %p905_p3 = scmp.ne.s32.totalorder (!%p904_p7), %s895_s25, 0 }
  0x4d   : > { %215 = sbr.rel (%p904_p7) target bundleno = 420 (0x1a4), region = 36  ;;  %s403_s30 = sshll.u32 (!%p904_p7), %s812_s22, 3 }
  0x4e   : > { %s218_s29 = scalar_lea.sflag (!%p904_p7), [#allocation3], %s812_s22  ;;  %s221_s7 = scalar_lea.vmem (!%p904_p7), [#allocation2], %s403_s30 }
  0x54   : > { %598 = dma.done.wait (%p905_p3), %s218_s29, 128  }
  0x55   : > { %600 = vsyncadd (%p905_p3), %s218_s29, 4294967168  ;;  %p906_p2 = scmp.ne.s32.totalorder %s893_s23, 0 }
  0x57   : > { %602 = dma.done.wait (%p906_p2), [#allocation6], 128  }
  0x58   : > { %604 = vsyncadd (%p906_p2), [#allocation6], 4294967168  ;;  %v251_v0 = vld [vmem:[%s221_s7] sm:$0xff]  ;;  %v252_v1 = vld [vmem:[#allocation5] sm:$0xff]  ;;  %vm256_vm0 = vcmask 261120   ;;  %s405_s23 = sshll.u32 %s812_s22, 2 }
  0x59   : > { %v253_v2 = vadd.f32 %v252_v1, %v251_v0  ;;  %v406_v13 = vld [vmem:[%s886_s2] ss:$0 sm:$0xff]  ;;  %s409_s21 = sshll.u32 %s623_s18, 6  ;;  %s249_s6 = scalar_lea.vmem [#allocation7], %s405_s23  ;;  %vm286_vm1 = vcmask 257024  }
  0x5a   : > { %v407_v15 = vld [vmem:[%s887_s3] ss:$0 sm:$0xff]  ;;  %s303_s11 = sshll.u32 %s249_s6, 4  ;;  %s835_s24 = scalar_lea.hbm %s888_s4, %s409_s21  ;;  %s837_s11 = int_to_ptr.vmem [resolvable:$true] %s303_s11 }
  0x5b   : > { %v257_v3 = vsel %vm256_vm0, %v253_v2, 0.0  ;;  %s289_s28 = scalar_lea.sflag [#allocation4], %s812_s22  ;;  %s545_s30 = scalar_lea.vmem %s837_s11, 64 }
  0x5c   : > { %258 = vadd.xlane.f32.xlu0 %v257_v3  ;;  %p546_p11 = scmp.ne.s32.totalorder %s837_s11, %s545_s30  ;;  %s635_s18 = smov [#allocation7]  }
  0x5d   : > { %s549_s29 = sshll.u32 %s635_s18, 4  ;;  %s550_s29 = int_to_ptr.vmem [resolvable:$false] %s549_s29 }
  0x5e   : > { %p547_p6 = pnand %p546_p11, %p762_p13  ;;  %s551_s7 = scalar_lea.vmem %s550_s29, 128 }
  0x5f   : > { %p552_p9 = scmp.lt.s32.totalorder %s837_s11, %s550_s29  ;;  %p553_p12 = scmp.lt.s32.totalorder %s551_s7, %s545_s30 }
  0x60   : > { %p548_p8 = pneg %p547_p6 }
  0x61   : > { %p554_p0 = por %p553_p12, %p552_p9 }
  0x63   : > { %p555_p5 = pnand %p554_p0, %p548_p8 }
  0xe9   : > { %v259_v4 = vpop.xlane.xlu0 %258 }
  0xea   : > { %v261_v5 = vmul.f32 0.03125, %v259_v4 }
  0xec   : > { %v262_v6 = vsub.f32 %v253_v2, %v261_v5 }
  0xee   : > { %v263_v7 = vmul.f32 %v262_v6, %v262_v6 }
  0xf0   : > { %v264_v8 = vsel %vm256_vm0, %v263_v7, 0.0 }
  0xf1   : > { %265 = vadd.xlane.f32.xlu0 %v264_v8 }
 0x17e   : > { %v266_v9 = vpop.xlane.xlu0 %265 }
 0x17f   : > { %v267_v10 = vmul.f32 0.03125, %v266_v9 }
 0x181   : > { %v268_v11 = vadd.f32 1e-12, %v267_v10 }
 0x183   : > { %485 = vrsqrt.f32 %v268_v11 }
 0x18d   : > { %v486_v12 = vpop.eup %485 }
 0x18e   : > { %v270_v14 = vmul.f32 %v486_v12, %v262_v6 }
 0x190   : > { %v277_v16 = vmul.f32 %v406_v13, %v270_v14 }
 0x192   : > { %v284_v17 = vadd.f32 %v407_v15, %v277_v16 }
 0x194   : > { %v285_v18 = vpack.c.bf16 %v284_v17, %v284_v17 }
 0x196   : > { %287 = vst.msk [vmem:[%s249_s6] sm:$0xf] %vm286_vm1, %v285_v18 }
 0x197   : > { %558 = shalt.err (!%p555_p5)
}
 0x198   : > { %s559_s22 = scalar_lea.hbm %s835_s24, 64  ;;  %s563_s27 = scalar_lea.hbm %s888_s4, 128 }
 0x199   : > { %p560_p10 = scmp.ne.s32.totalorder %s835_s24, %s559_s22  ;;  %p564_p7 = scmp.lt.u32.totalorder %s835_s24, %s888_s4 }
 0x19a   : > { %p565_p3 = scmp.lt.u32.totalorder %s563_s27, %s559_s22  ;;  %p567_p11 = scmp.lt.u32.totalorder %s559_s22, %s835_s24 }
 0x19b   : > { %p561_p4 = pnand %p560_p10, %p762_p13 }
 0x19c   : > { %p566_p2 = por %p565_p3, %p564_p7 }
 0x19d   : > { %p562_p1 = pneg %p561_p4 }
 0x19e   : > { %p568_p6 = por %p567_p11, %p566_p2 }
 0x1a0   : > { %p569_p8 = pnand %p568_p6, %p562_p1 }
 0x1a2   : > { %572 = shalt.err (!%p569_p8)
}
 0x1a3   : > { %418 = dma.vmem_to_hbm [thread:$0]  (%p762_p13), %s837_s11, 64, %s835_s24, %s289_s28  }
 0x1a4 PF: > { %s315_s21 = sand.u32 1, %s611_s15   ;;  %p907_p9 = scmp.ne.s32.totalorder %s896_s26, 0 }
 0x1a5   : > { %p908_p12 = scmp.ge.s32.totalorder %s631_s20, 2  ;;  %s316_s6 = scalar_lea.sflag [#allocation4], %s315_s21 }
 0x1a7   : > { %p429_p0 = pnand %p908_p12, %p907_p9 }
 0x1a9   : > { %606 = dma.done.wait (!%p429_p0), %s316_s6, 64  }
 0x1aa   : > { %608 = vsyncadd (!%p429_p0), %s316_s6, 4294967232  ;;  %s21_s20 = sadd.s32 1, %s631_s20   ;;  %s909_s15 = smov %s615_s16 }
 0x1ab   : > { %p18_p5 = scmp.ge.s32.totalorder %s21_s20, 4   ;;  %s910_s16 = smov %s619_s17 }
 0x1ac   : > { %s911_s17 = smov %s770_s10  ;;  %s912_s18 = smov %s627_s19 }
 0x1ad   : > { %s913_s19 = smov %s915_s5  ;;  %20 = sbr.rel (!%p18_p5) target bundleno = 7 (0x7), region = 86 }
 0x1b4   :  { %321 = vsyncpa [#allocation3], 1 }
 0x1b5   :  { %323 = vsyncpa [#allocation3 + $0x1], 1 }
 0x1b6   :  { %324 = vsyncpa [#allocation6], 1 }
 0x1b7   :  { %325 = vsyncpa [#allocation4], 1 }
 0x1b8   :  { %327 = vsyncpa [#allocation4 + $0x1], 1 }

</bundles_post_ra>
